<compile_context>
chip_gen: v7x
topology: tpu7x:2x2x1
jax: 0.10.0
libtpu: 0.0.40
codegen_flags: <defaults>
</compile_context>

<pallas_src>
import jax
import jax.numpy as jnp
from jax.experimental import pallas as pl
from jax.experimental.pallas import tpu as pltpu


def _round_up(x, m):
    return ((x + m - 1) // m) * m


def make_mlp_kernel(num_hidden):
    """Build a kernel for `num_hidden` (= L) no-bias hidden layers + biased output layer.

    Ref layout (all feature dims already padded to multiples of 128):
      x_ref            : (TB, Din_p)     bf16  input rows for this grid step
      w_refs[0..L-1]   : (Din_p, Dm_p) / (Dm_p, Dm_p)  bf16  pre-transposed hidden weights
      wo_ref           : (Dm_p, Op)      bf16  pre-transposed output weight
      bo_ref           : (1, Op)         f32   output bias
      o_ref            : (TB, Op)        f32   output rows
    """

    def kernel(*refs):
        x_ref = refs[0]
        w_refs = refs[1:1 + num_hidden]
        wo_ref, bo_ref, o_ref = refs[1 + num_hidden:]

        bias = bo_ref[...]                      # hoisted: loaded once per grid step (f32)
        h = x_ref[...]                          # bf16 activations, fed straight to the MXU
        for k in range(num_hidden):             # L is small & static -> unrolled
            acc = jnp.dot(h, w_refs[k][...],
                          preferred_element_type=jnp.float32)   # f32 accumulation
            h = jnp.tanh(acc).astype(jnp.bfloat16)              # tanh in f32, bf16 operand out
        out = jnp.dot(h, wo_ref[...], preferred_element_type=jnp.float32)
        o_ref[...] = out + bias                 # f32 epilogue, lane-dense (Op % 128 == 0)

    return kernel


def mlp_forward(x, w_hidden, w_out, b_out, *, tb=512):
    """MLPShrink forward.

    x        : (B, i_dim) float32
    w_hidden : list of L weights in PyTorch layout: [ (m_dim, i_dim), (m_dim, m_dim), ... ]
    w_out    : (o_dim, m_dim)
    b_out    : (o_dim,)
    tb       : requested batch tile (rows per grid step, multiple of 8)
    """
    B, i_dim = x.shape
    o_dim, m_dim = w_out.shape
    L = len(w_hidden)

    # Lane-dense padded dims.
    din_p = _round_up(i_dim, 128)
    dm_p = _round_up(m_dim, 128)
    o_p = _round_up(o_dim, 128)

    # Batch tiling (multiple of 8 sublanes); pad B up to a whole number of tiles.
    tb = max(8, min(_round_up(tb, 8), _round_up(B, 8)))
    b_p = _round_up(B, tb)

    # Zero-pad + pre-transpose (x @ W.T == x @ W_t) + cast MXU operands to bf16.
    x_p = jnp.zeros((b_p, din_p), jnp.bfloat16).at[:B, :i_dim].set(x.astype(jnp.bfloat16))

    w_ts = []
    in_dims = [i_dim] + [m_dim] * (L - 1)
    in_dims_p = [din_p] + [dm_p] * (L - 1)
    for w, di, dip in zip(w_hidden, in_dims, in_dims_p):
        wt = jnp.zeros((dip, dm_p), jnp.bfloat16).at[:di, :m_dim].set(w.T.astype(jnp.bfloat16))
        w_ts.append(wt)
    wo_t = jnp.zeros((dm_p, o_p), jnp.bfloat16).at[:m_dim, :o_dim].set(w_out.T.astype(jnp.bfloat16))
    bo_p = jnp.zeros((1, o_p), jnp.float32).at[:, :o_dim].set(
        b_out.reshape(1, o_dim).astype(jnp.float32))

    def resident(a):
        # Full-array block, constant index map -> stays resident in VMEM across grid steps.
        return pl.BlockSpec(a.shape, lambda i, _nd=a.ndim: (0,) * _nd)

    grid = (b_p // tb,)
    out = pl.pallas_call(
        make_mlp_kernel(L),
        out_shape=jax.ShapeDtypeStruct((b_p, o_p), jnp.float32),
        grid=grid,
        in_specs=[pl.BlockSpec((tb, din_p), lambda i: (i, 0))]     # x: tiled over batch
        + [resident(w) for w in w_ts]                              # hidden weights: resident
        + [resident(wo_t), resident(bo_p)],                        # out weight + bias: resident
        out_specs=pl.BlockSpec((tb, o_p), lambda i: (i, 0)),
        compiler_params=pltpu.CompilerParams(
            dimension_semantics=("parallel",),                     # batch axis -> megacore/2xTC
        ),
    )(x_p, *w_ts, wo_t, bo_p)

    return out[:B, :o_dim]


def orthogonal_init(key, shape, gain=1.0):
    """Deterministic orthogonal matrix of `shape` (rows, cols), like nn.init.orthogonal_."""
    rows, cols = shape
    n = max(rows, cols)
    a = jax.random.normal(key, (n, n), dtype=jnp.float32)
    q, r = jnp.linalg.qr(a)
    q = q * jnp.sign(jnp.diag(r))[None, :]
    return (gain * q[:rows, :cols]).astype(jnp.float32)


if __name__ == "__main__":
    # Small shapes consistent with the module: L=3 hidden layers,
    # i_dim=32 -> m_dim=48 (first layer rectangular, as in MLPShrink), o_dim=10, batch=16.
    L, i_dim, m_dim, o_dim, B = 3, 32, 48, 10, 16

    key = jax.random.PRNGKey(0)
    keys = jax.random.split(key, L + 3)

    x = jax.random.normal(keys[0], (B, i_dim), dtype=jnp.float32)

    # Hidden weights in PyTorch layout (out_features, in_features), orthogonal init, no bias.
    w_hidden = []
    for k in range(L):
        rows, cols = (m_dim, i_dim) if k == 0 else (m_dim, m_dim)
        w_hidden.append(orthogonal_init(keys[1 + k], (rows, cols), gain=1.0))

    # Output layer: W (o_dim, m_dim) orthogonal, bias ~ uniform(-1/o_dim, 1/o_dim).
    w_out = orthogonal_init(keys[L + 1], (o_dim, m_dim), gain=1.0)
    b_out = jax.random.uniform(
        keys[L + 2], (o_dim,), minval=-1.0 / o_dim, maxval=1.0 / o_dim, dtype=jnp.float32
    )

    # tb=8 so this tiny example still exercises a multi-step (pipelined) grid.
    y = mlp_forward(x, w_hidden, w_out, b_out, tb=8)
    y = jax.block_until_ready(y)

    # Pure-JAX reference with identical numerics (bf16 MXU operands, f32 accumulation, f32 tanh).
    h = x
    for w in w_hidden:
        h = jnp.tanh(
            jnp.dot(h.astype(jnp.bfloat16), w.T.astype(jnp.bfloat16),
                    preferred_element_type=jnp.float32)
        )
    y_ref = jnp.dot(h.astype(jnp.bfloat16), w_out.T.astype(jnp.bfloat16),
                    preferred_element_type=jnp.float32) + b_out[None, :]

    assert y.shape == (B, o_dim)
    assert jnp.allclose(y, y_ref, atol=1e-4, rtol=1e-4), "mismatch vs reference"
    print("KERNEL_OK")
</pallas_src>

<mosaic_0001>
module attributes {stable_mosaic.version = 11 : i64} {
  func.func @kernel(%arg0: i32, %arg1: memref<8x128xbf16, #tpu.memory_space<vmem>>, %arg2: memref<128x128xbf16, #tpu.memory_space<vmem>>, %arg3: memref<128x128xbf16, #tpu.memory_space<vmem>>, %arg4: memref<128x128xbf16, #tpu.memory_space<vmem>>, %arg5: memref<128x128xbf16, #tpu.memory_space<vmem>>, %arg6: memref<1x128xf32, #tpu.memory_space<vmem>>, %arg7: memref<8x128xf32, #tpu.memory_space<vmem>>) attributes {dimension_semantics = [#tpu.dimension_semantics<parallel>], iteration_bounds = array<i64: 2>, scalar_prefetch = 0 : i64, scratch_operands = 0 : i64, tpu.core_type = #tpu.core_type<tc>, window_params = [{transform_indices = @transform_0, window_bounds = array<i64: 8, 128>}, {pipeline_mode = #tpu.pipeline_mode<synchronous>, transform_indices = @transform_1, window_bounds = array<i64: 128, 128>}, {pipeline_mode = #tpu.pipeline_mode<synchronous>, transform_indices = @transform_2, window_bounds = array<i64: 128, 128>}, {pipeline_mode = #tpu.pipeline_mode<synchronous>, transform_indices = @transform_3, window_bounds = array<i64: 128, 128>}, {pipeline_mode = #tpu.pipeline_mode<synchronous>, transform_indices = @transform_4, window_bounds = array<i64: 128, 128>}, {pipeline_mode = #tpu.pipeline_mode<synchronous>, transform_indices = @transform_5, window_bounds = array<i64: 1, 128>}, {transform_indices = @transform_6, window_bounds = array<i64: 8, 128>}]} {
    %c0 = arith.constant 0 : index
    %c0_0 = arith.constant 0 : index
    %0 = vector.load %arg6[%c0, %c0_0] : memref<1x128xf32, #tpu.memory_space<vmem>>, vector<1x128xf32>
    %c0_1 = arith.constant 0 : index
    %c0_2 = arith.constant 0 : index
    %1 = vector.load %arg1[%c0_1, %c0_2] : memref<8x128xbf16, #tpu.memory_space<vmem>>, vector<8x128xbf16>
    %c0_3 = arith.constant 0 : index
    %c0_4 = arith.constant 0 : index
    %2 = vector.load %arg2[%c0_3, %c0_4] : memref<128x128xbf16, #tpu.memory_space<vmem>>, vector<128x128xbf16>
    %cst = arith.constant dense<0.000000e+00> : vector<8x128xf32>
    %3 = tpu.matmul %1, %2, %cst {dimension_numbers = #tpu.dot_dimension_numbers<[1], [0], [0], [1], [0, 0, 1, 1], [], []>} : vector<8x128xbf16>, vector<128x128xbf16>, vector<8x128xf32> -> vector<8x128xf32>
    %4 = math.tanh %3 : vector<8x128xf32>
    %5 = arith.truncf %4 : vector<8x128xf32> to vector<8x128xbf16>
    %c0_5 = arith.constant 0 : index
    %c0_6 = arith.constant 0 : index
    %6 = vector.load %arg3[%c0_5, %c0_6] : memref<128x128xbf16, #tpu.memory_space<vmem>>, vector<128x128xbf16>
    %cst_7 = arith.constant dense<0.000000e+00> : vector<8x128xf32>
    %7 = tpu.matmul %5, %6, %cst_7 {dimension_numbers = #tpu.dot_dimension_numbers<[1], [0], [0], [1], [0, 0, 1, 1], [], []>} : vector<8x128xbf16>, vector<128x128xbf16>, vector<8x128xf32> -> vector<8x128xf32>
    %8 = math.tanh %7 : vector<8x128xf32>
    %9 = arith.truncf %8 : vector<8x128xf32> to vector<8x128xbf16>
    %c0_8 = arith.constant 0 : index
    %c0_9 = arith.constant 0 : index
    %10 = vector.load %arg4[%c0_8, %c0_9] : memref<128x128xbf16, #tpu.memory_space<vmem>>, vector<128x128xbf16>
    %cst_10 = arith.constant dense<0.000000e+00> : vector<8x128xf32>
    %11 = tpu.matmul %9, %10, %cst_10 {dimension_numbers = #tpu.dot_dimension_numbers<[1], [0], [0], [1], [0, 0, 1, 1], [], []>} : vector<8x128xbf16>, vector<128x128xbf16>, vector<8x128xf32> -> vector<8x128xf32>
    %12 = math.tanh %11 : vector<8x128xf32>
    %13 = arith.truncf %12 : vector<8x128xf32> to vector<8x128xbf16>
    %c0_11 = arith.constant 0 : index
    %c0_12 = arith.constant 0 : index
    %14 = vector.load %arg5[%c0_11, %c0_12] : memref<128x128xbf16, #tpu.memory_space<vmem>>, vector<128x128xbf16>
    %cst_13 = arith.constant dense<0.000000e+00> : vector<8x128xf32>
    %15 = tpu.matmul %13, %14, %cst_13 {dimension_numbers = #tpu.dot_dimension_numbers<[1], [0], [0], [1], [0, 0, 1, 1], [], []>} : vector<8x128xbf16>, vector<128x128xbf16>, vector<8x128xf32> -> vector<8x128xf32>
    %16 = vector.broadcast %0 : vector<1x128xf32> to vector<8x128xf32>
    %17 = arith.addf %15, %16 : vector<8x128xf32>
    %c0_14 = arith.constant 0 : index
    %c0_15 = arith.constant 0 : index
    %18 = vector.load %arg7[%c0_14, %c0_15] : memref<8x128xf32, #tpu.memory_space<vmem>>, vector<8x128xf32>
    tpu.vector_store %arg7[%c0_14, %c0_15], %17 {strides = array<i32>} : memref<8x128xf32, #tpu.memory_space<vmem>>, vector<8x128xf32>,
    return
  }
  func.func @transform_0(%arg0: i32) -> (i32, i32) {
    %c0_i32 = arith.constant 0 : i32
    %c0_i32_0 = arith.constant 0 : i32
    return %arg0, %c0_i32 : i32, i32
  }
  func.func @transform_1(%arg0: i32) -> (i32, i32) {
    %c0_i32 = arith.constant 0 : i32
    %c0_i32_0 = arith.constant 0 : i32
    %c0_i32_1 = arith.constant 0 : i32
    return %c0_i32, %c0_i32_0 : i32, i32
  }
  func.func @transform_2(%arg0: i32) -> (i32, i32) {
    %c0_i32 = arith.constant 0 : i32
    %c0_i32_0 = arith.constant 0 : i32
    %c0_i32_1 = arith.constant 0 : i32
    return %c0_i32, %c0_i32_0 : i32, i32
  }
  func.func @transform_3(%arg0: i32) -> (i32, i32) {
    %c0_i32 = arith.constant 0 : i32
    %c0_i32_0 = arith.constant 0 : i32
    %c0_i32_1 = arith.constant 0 : i32
    return %c0_i32, %c0_i32_0 : i32, i32
  }
  func.func @transform_4(%arg0: i32) -> (i32, i32) {
    %c0_i32 = arith.constant 0 : i32
    %c0_i32_0 = arith.constant 0 : i32
    %c0_i32_1 = arith.constant 0 : i32
    return %c0_i32, %c0_i32_0 : i32, i32
  }
  func.func @transform_5(%arg0: i32) -> (i32, i32) {
    %c0_i32 = arith.constant 0 : i32
    %c0_i32_0 = arith.constant 0 : i32
    %c0_i32_1 = arith.constant 0 : i32
    return %c0_i32, %c0_i32_0 : i32, i32
  }
  func.func @transform_6(%arg0: i32) -> (i32, i32) {
    %c0_i32 = arith.constant 0 : i32
    %c0_i32_0 = arith.constant 0 : i32
    return %arg0, %c0_i32 : i32, i32
  }
}

</mosaic_0001>

<bundles_post_ra>
// kernel: tpu_custom_call.1
= control target key start
LH: loop header
LB: loop body
LE: loop exit
PB: predicated region body
PF: predicated region fallthrough
CT: control target
= control target key end

     0   :  { %11 = vsyncpa [#allocation3], 0  ;;  %s1779_s0 = inlined_call_operand.hbm [shape: bf16[16,128], index: 0, kind: input, shape index: {}]   ;;  %s1780_s1 = inlined_call_operand.hbm [shape: bf16[128,128], index: 1, kind: input, shape index: {}]   ;;  %s1781_s2 = inlined_call_operand.hbm [shape: bf16[128,128], index: 2, kind: input, shape index: {}]   ;;  %s1782_s3 = inlined_call_operand.hbm [shape: bf16[128,128], index: 3, kind: input, shape index: {}]   ;;  %s1783_s4 = inlined_call_operand.hbm [shape: bf16[128,128], index: 4, kind: input, shape index: {}]   ;;  %s1784_s5 = inlined_call_operand.vmem [shape: f32[1,128], index: 5, kind: input, shape index: {}]   ;;  %s1785_s6 = inlined_call_operand.hbm [shape: f32[16,128], index: 6, kind: output, shape index: {}]  }
   0x1   :  { %13 = vsyncpa [#allocation3 + $0x1], 0 }
   0x2   :  { %14 = vsyncpa [#allocation6], 0 }
   0x3   :  { %15 = vsyncpa [#allocation9], 0 }
   0x4   :  { %16 = vsyncpa [#allocation4], 0 }
   0x5   :  { %18 = vsyncpa [#allocation4 + $0x1], 0  ;;  %s1440_s21 = smov 0   ;;  %s1442_s22 = smov 0  }
   0x6   :  { %s1444_s23 = smov 0   ;;  %s1446_s24 = smov 0  }
   0x7 LB: > { %s1395_s25 = smov [#allocation5]   ;;  %s1461_s27 = sadd.s32 4294967295, %s1393_s24   ;;  %s1393_s24 = sphi %s1446_s24, %s1809_s24   ;;  %s1389_s23 = sphi %s1444_s23, %s1808_s23   ;;  %s1385_s22 = sphi %s1442_s22, %s1807_s22   ;;  %s1381_s21 = sphi %s1440_s21, %s1806_s21  }
   0x8   : > { %s198_s26 = sshll.u32 %s1395_s25, 4  ;;  %p880_p0 = scmp.ge.s32.totalorder %s1393_s24, 1  ;;  %s1466_s26 = int_to_ptr.vmem [resolvable:$true] %s198_s26 }
   0x9   : > { %p1786_p1 = scmp.eq.s32.totalorder %s1461_s27, 0  ;;  %p186_p2 = scmp.lt.s32.totalorder %s1393_s24, 3 }
   0xa   : > { %s1396_s29 = smov [#allocation8]   ;;  %s1397_s8 = smov [#allocation7]  }
   0xb   : > { %p1468_p3 = pnand %p880_p0, %p186_p2  ;;  %s224_s30 = sshll.u32 %s1396_s29, 4  ;;  %s1481_s30 = int_to_ptr.vmem [resolvable:$true] %s224_s30 }
   0xc   : > { %s211_s9 = sshll.u32 %s1397_s8, 4  ;;  %s1177_s12 = scalar_lea.hbm %s1780_s1, 1024  ;;  %s1483_s9 = int_to_ptr.vmem [resolvable:$true] %s211_s9 }
   0xd   : > { %s1789_s28 = scalar_select %p1468_p3, 1, 0 }
   0xe   : > { %p1068_p5 = pneg %p1468_p3  ;;  %p1178_p7 = scmp.ne.s32.totalorder %s1780_s1, %s1177_s12 }
   0xf   : > { %p1184_p11 = scmp.lt.u32.totalorder %s1177_s12, %s1780_s1 }
  0x10   : > { %p1477_p6 = pnand %p1068_p5, %p1786_p1 }
  0x12   : > { %p1493_p8 = pneg %p1477_p6 }
  0x14   : > { %p1180_p9 = pnand %p1493_p8, %p1178_p7 }
  0x16   : > { %p1181_p10 = pneg %p1180_p9 }
  0x18   : > { %p1186_p12 = pnand %p1184_p11, %p1181_p10 }
  0x1a   : > { %1189 = shalt.err (!%p1186_p12)
}
  0x1b   : > { %s1190_s18 = scalar_lea.vmem %s1466_s26, 1024  ;;  %p1198_p5 = scmp.lt.s32.totalorder %s1466_s26, %s1466_s26 }
  0x1c   : > { %p1191_p13 = scmp.ne.s32.totalorder %s1466_s26, %s1190_s18  ;;  %p1199_p4 = scmp.lt.s32.totalorder %s1190_s18, %s1190_s18 }
  0x1e   : > { %p1193_p0 = pnand %p1191_p13, %p1493_p8  ;;  %p1200_p7 = por %p1199_p4, %p1198_p5 }
  0x20   : > { %p1194_p2 = pneg %p1193_p0 }
  0x22   : > { %p1201_p9 = pnand %p1200_p7, %p1194_p2 }
  0x24   : > { %1204 = shalt.err (!%p1201_p9)
}
  0x25   : > { %s1398_s19 = smov 64   ;;  %s1399_s20 = smov 4  }
  0x26   : > { %1071 = dma.hbm_to_vmem [thread:$0]  (!%p1477_p6), %s1780_s1, 1024, %s1466_s26, [#allocation6], %s1398_s19, %s1398_s19, %s1399_s20  }
  0x27   : > { %s1205_s11 = scalar_lea.hbm %s1782_s3, 1024 }
  0x28   : > { %p1206_p4 = scmp.ne.s32.totalorder %s1782_s3, %s1205_s11  ;;  %p1212_p12 = scmp.lt.u32.totalorder %s1205_s11, %s1782_s3 }
  0x2a   : > { %p1208_p10 = pnand %p1206_p4, %p1493_p8 }
  0x2c   : > { %p1209_p11 = pneg %p1208_p10 }
  0x2e   : > { %p1214_p13 = pnand %p1212_p12, %p1209_p11 }
  0x30   : > { %1217 = shalt.err (!%p1214_p13)
}
  0x31   : > { %s1218_s26 = scalar_lea.vmem %s1481_s30, 1024  ;;  %p1226_p7 = scmp.lt.s32.totalorder %s1481_s30, %s1481_s30 }
  0x32   : > { %p1219_p0 = scmp.ne.s32.totalorder %s1481_s30, %s1218_s26  ;;  %p1227_p9 = scmp.lt.s32.totalorder %s1218_s26, %s1218_s26 }
  0x34   : > { %p1221_p2 = pnand %p1219_p0, %p1493_p8  ;;  %p1228_p4 = por %p1227_p9, %p1226_p7 }
  0x36   : > { %p1222_p5 = pneg %p1221_p2 }
  0x38   : > { %p1229_p10 = pnand %p1228_p4, %p1222_p5 }
  0x3a   : > { %1232 = shalt.err (!%p1229_p10)
}
  0x3b   : > { %1077 = dma.hbm_to_vmem [thread:$0]  (!%p1477_p6), %s1782_s3, 1024, %s1481_s30, [#allocation9], %s1398_s19, %s1398_s19, %s1399_s20  }
  0x3c   : > { %s1233_s8 = scalar_lea.hbm %s1781_s2, 1024 }
  0x3d   : > { %p1234_p11 = scmp.ne.s32.totalorder %s1781_s2, %s1233_s8  ;;  %p1240_p0 = scmp.lt.u32.totalorder %s1233_s8, %s1781_s2 }
  0x3f   : > { %p1236_p12 = pnand %p1234_p11, %p1493_p8 }
  0x41   : > { %p1237_p13 = pneg %p1236_p12 }
  0x43   : > { %p1242_p2 = pnand %p1240_p0, %p1237_p13 }
  0x45   : > { %1245 = shalt.err (!%p1242_p2)
}
  0x46   : > { %s1246_s30 = scalar_lea.vmem %s1483_s9, 1024  ;;  %p1254_p4 = scmp.lt.s32.totalorder %s1483_s9, %s1483_s9 }
  0x47   : > { %p1247_p5 = scmp.ne.s32.totalorder %s1483_s9, %s1246_s30  ;;  %p1255_p10 = scmp.lt.s32.totalorder %s1246_s30, %s1246_s30 }
  0x49   : > { %p1249_p7 = pnand %p1247_p5, %p1493_p8  ;;  %p1256_p11 = por %p1255_p10, %p1254_p4 }
  0x4b   : > { %p1250_p9 = pneg %p1249_p7 }
  0x4d   : > { %p1257_p12 = pnand %p1256_p11, %p1250_p9 }
  0x4f   : > { %1260 = shalt.err (!%p1257_p12)
}
  0x50   : > { %1074 = dma.hbm_to_vmem [thread:$0]  (!%p1477_p6), %s1781_s2, 1024, %s1483_s9, [#allocation6], %s1398_s19, %s1398_s19, %s1399_s20  }
  0x51   : > { %s1400_s26 = smov [#allocation10]   ;;  %s1261_s29 = scalar_lea.hbm %s1783_s4, 1024 }
  0x52   : > { %s237_s17 = sshll.u32 %s1400_s26, 4  ;;  %p1262_p13 = scmp.ne.s32.totalorder %s1783_s4, %s1261_s29  ;;  %s238_s17 = int_to_ptr.vmem [resolvable:$true] %s237_s17 }
  0x53   : > { %p1268_p5 = scmp.lt.u32.totalorder %s1261_s29, %s1783_s4 }
  0x54   : > { %p1264_p0 = pnand %p1262_p13, %p1493_p8 }
  0x56   : > { %p1265_p2 = pneg %p1264_p0 }
  0x58   : > { %p1270_p7 = pnand %p1268_p5, %p1265_p2 }
  0x5a   : > { %1273 = shalt.err (!%p1270_p7)
}
  0x5b   : > { %s1274_s9 = scalar_lea.vmem %s238_s17, 1024  ;;  %p1282_p11 = scmp.lt.s32.totalorder %s238_s17, %s238_s17 }
  0x5c   : > { %p1275_p9 = scmp.ne.s32.totalorder %s238_s17, %s1274_s9  ;;  %p1283_p12 = scmp.lt.s32.totalorder %s1274_s9, %s1274_s9 }
  0x5e   : > { %p1277_p4 = pnand %p1275_p9, %p1493_p8  ;;  %p1284_p1 = por %p1283_p12, %p1282_p11 }
  0x60   : > { %p1278_p10 = pneg %p1277_p4 }
  0x62   : > { %p1285_p3 = pnand %p1284_p1, %p1278_p10 }
  0x64   : > { %1288 = shalt.err (!%p1285_p3)
}
  0x65   : > { %1080 = dma.hbm_to_vmem [thread:$0]  (!%p1477_p6), %s1783_s4, 1024, %s238_s17, [#allocation9], %s1398_s19, %s1398_s19, %s1399_s20  }
  0x66   : > { %s879_s7 = sadd.s32 4294967294, %s1393_s24   ;;  %s1592_s15 = sadd.s32 1, %s1393_s24  }
  0x67   : > { %s28_s14 = ssub.s32 %s1393_s24, %s1592_s15  ;;  %s31_s16 = sadd.s32 1, %s1389_s23 }
  0x68   : > { %p29_p1 = scmp.eq.s32.totalorder %s28_s14, 0  ;;  %p38_p3 = scmp.ne.s32.totalorder %s1389_s23, %s1385_s22 }
  0x69   : > { %p39_p8 = scmp.eq.s32.totalorder %s1393_s24, 0  ;;  %p44_p13 = scmp.ne.s32.totalorder %s1385_s22, %s1381_s21 }
  0x6a   : > { %s1603_s26 = scalar_select %p29_p1, %s1389_s23, %s31_s16  }
  0x6b   : > { %p1605_p0 = por %p39_p8, %p38_p3  ;;  %p1793_p2 = scmp.eq.s32.totalorder %s1461_s27, 0 }
  0x6c   : > { %p173_p5 = scmp.eq.s32.totalorder %s1461_s27, 1  ;;  %p179_p7 = scmp.eq.s32.totalorder %s879_s7, 1 }
  0x6d   : > { %p1611_p6 = por %p1793_p2, %p44_p13  ;;  %p1093_p9 = scmp.lt.s32.totalorder %s1393_s24, 2 }
  0x6e   : > { %s254_s20 = sand.u32 1, %s1389_s23   ;;  %p1618_p4 = por %p173_p5, %p38_p3 }
  0x6f   : > { %p1622_p10 = por %p179_p7, %p44_p13  ;;  %s886_s29 = sshll.u32 %s254_s20, 2 }
  0x70   : > { %s1795_s17 = scalar_select %p1618_p4, 1, 0 }
  0x71   : > { %s1796_s25 = scalar_select %p1622_p10, 1, 0 }
  0x72   : > { %s887_s8 = sshll.u32 %s1393_s24, 6  ;;  %s258_s9 = scalar_lea.vmem [#allocation2], %s886_s29 }
  0x73   : > { %s1630_s12 = scalar_lea.hbm %s1779_s0, %s887_s8  ;;  %s265_s13 = sshll.u32 %s258_s9, 4  ;;  %s1632_s13 = int_to_ptr.vmem [resolvable:$true] %s265_s13 }
  0x74   : > { %p1636_p11 = pnand %p1093_p9, %p1605_p0  ;;  %s255_s7 = scalar_lea.sflag [#allocation3], %s254_s20 }
  0x75   : > { %s1289_s14 = scalar_lea.hbm %s1630_s12, 64  ;;  %s1294_s8 = scalar_lea.hbm %s1779_s0, 128 }
  0x76   : > { %p1290_p12 = scmp.ne.s32.totalorder %s1630_s12, %s1289_s14  ;;  %p1291_p1 = pneg %p1636_p11 }
  0x77   : > { %p1295_p13 = scmp.lt.u32.totalorder %s1630_s12, %s1779_s0  ;;  %p1296_p0 = scmp.lt.u32.totalorder %s1294_s8, %s1289_s14 }
  0x78   : > { %p1292_p3 = pnand %p1291_p1, %p1290_p12  ;;  %p1298_p5 = scmp.lt.u32.totalorder %s1289_s14, %s1630_s12 }
  0x79   : > { %p1297_p2 = por %p1296_p0, %p1295_p13 }
  0x7a   : > { %p1293_p8 = pneg %p1292_p3 }
  0x7b   : > { %p1299_p7 = por %p1298_p5, %p1297_p2 }
  0x7d   : > { %p1300_p9 = pnand %p1299_p7, %p1293_p8 }
  0x7f   : > { %1303 = shalt.err (!%p1300_p9)
}
  0x80   : > { %s1304_s20 = scalar_lea.vmem %s1632_s13, 64  ;;  %s1401_s11 = smov [#allocation2]  }
  0x81   : > { %p1305_p12 = scmp.ne.s32.totalorder %s1632_s13, %s1304_s20  ;;  %s1309_s9 = sshll.u32 %s1401_s11, 4  ;;  %s1310_s9 = int_to_ptr.vmem [resolvable:$false] %s1309_s9 }
  0x82   : > { %s1311_s16 = scalar_lea.vmem %s1310_s9, 128  ;;  %p1312_p4 = scmp.lt.s32.totalorder %s1632_s13, %s1310_s9 }
  0x83   : > { %p1307_p3 = pnand %p1305_p12, %p1291_p1  ;;  %p1313_p13 = scmp.lt.s32.totalorder %s1311_s16, %s1304_s20 }
  0x85   : > { %p1308_p10 = pneg %p1307_p3  ;;  %p1314_p0 = por %p1313_p13, %p1312_p4 }
  0x87   : > { %p1315_p2 = pnand %p1314_p0, %p1308_p10 }
  0x89   : > { %1318 = shalt.err (!%p1315_p2)
}
  0x8a   : > { %1084 = dma.hbm_to_vmem [thread:$0]  (!%p1636_p11), %s1630_s12, 64, %s1632_s13, %s255_s7  }
  0x8b   : > { %p1798_p8 = scmp.ne.s32.totalorder %s1789_s28, 0 }
  0x8c   : > { %s1668_s14 = sand.u32 (!%p1798_p8), 1, %s1385_s22  }
  0x8d   : > { %274 = sbr.rel (%p1798_p8) target bundleno = 1092 (0x444), region = 44  ;;  %s889_s29 = sshll.u32 (!%p1798_p8), %s1668_s14, 2 }
  0x8e   : > { %s277_s8 = scalar_lea.sflag (!%p1798_p8), [#allocation3], %s1668_s14  ;;  %s1672_s18 = scalar_lea.vmem (!%p1798_p8), [#allocation2], %s889_s29 }
  0x94   : > { %1364 = dma.done.wait (%p1611_p6), %s277_s8, 64  }
  0x95   : > { %1366 = vsyncadd (%p1611_p6), %s277_s8, 4294967232  ;;  %p1799_p4 = scmp.eq.s32.totalorder %s1461_s27, 0 }
  0x97   : > { %1368 = dma.done.wait (%p1799_p4), [#allocation6], 2048   ;;  %p1800_p10 = pmov %p1799_p4 }
  0x98   : > { %p1801_p11 = pmov %p1799_p4 }
  0x99   : > { %1370 = vsyncadd (%p1800_p10), [#allocation6], 4294965248 }
  0x9a   : > { %1372 = dma.done.wait (%p1801_p11), [#allocation9], 2048   ;;  %p1802_p1 = pmov %p1799_p4 }
  0x9b   : > { %v1402_v0 = vmov 0.0   ;;  %vm1403_vm0 = vmmov 0   ;;  %v1139_v1 = vld [vmem:[#allocation5] sm:$0xff]   ;;  %v1140_v2 = vld [vmem:[#allocation5 + $0x8] sm:$0xff]   ;;  %v1141_v3 = vld [vmem:[#allocation5 + $0x10] sm:$0xff]   ;;  %s894_s28 = sshll.u32 %s1668_s14, 3 }
  0x9c   : > { %1374 = vsyncadd (%p1802_p1), [#allocation9], 4294965248  ;;  %968 = vmatprep.subr.bf16.mxu0 %v1402_v0  ;;  %984 = vmatprep.mubr.msk.bf16.mxu0 %vm1403_vm0, %v1402_v0  ;;  %v1147_v4 = vld [vmem:[#allocation7] sm:$0xff]   ;;  %v1142_v5 = vld [vmem:[#allocation5 + $0x18] sm:$0xff]   ;;  %s929_s13 = sshll.u32 %s1461_s27, 7  ;;  %s324_s30 = scalar_lea.vmem [#allocation11], %s894_s28 }
  0x9d   : > { %988 = vmatprep.subr.bf16.mxu1 %v1402_v0  ;;  %1004 = vmatprep.mubr.msk.bf16.mxu1 %vm1403_vm0, %v1402_v0  ;;  %v1148_v6 = vld [vmem:[#allocation7 + $0x8] sm:$0xff]   ;;  %v1143_v7 = vld [vmem:[#allocation5 + $0x20] sm:$0xff]   ;;  %v1149_v8 = vld [vmem:[#allocation7 + $0x10] sm:$0xff]   ;;  %s771_s7 = sshll.u32 %s324_s30, 4  ;;  %s1735_s11 = scalar_lea.hbm %s1785_s6, %s929_s13  ;;  %s1737_s7 = int_to_ptr.vmem [resolvable:$true] %s771_s7 }
  0x9e   : > { %969 = vmatpush3.bf16.msra.mxu0 %v1139_v1  ;;  %989 = vmatpush3.bf16.msra.mxu1 %v1147_v4  ;;  %v1144_v9 = vld [vmem:[#allocation5 + $0x28] sm:$0xff]   ;;  %v1150_v10 = vld [vmem:[#allocation7 + $0x18] sm:$0xff]   ;;  %v1145_v11 = vld [vmem:[#allocation5 + $0x30] sm:$0xff]   ;;  %s758_s9 = scalar_lea.sflag [#allocation4], %s1668_s14  ;;  %s1319_s27 = scalar_lea.vmem %s1737_s7, 128 }
  0x9f   : > { %970 = vmatprep.subr.bf16.mxu0 %v1402_v0  ;;  %990 = vmatprep.subr.bf16.mxu1 %v1402_v0  ;;  %v1151_v12 = vld [vmem:[#allocation7 + $0x20] sm:$0xff]   ;;  %v1146_v13 = vld [vmem:[#allocation5 + $0x38] sm:$0xff]   ;;  %v1152_v15 = vld [vmem:[#allocation7 + $0x28] sm:$0xff]   ;;  %p1320_p6 = scmp.ne.s32.totalorder %s1737_s7, %s1319_s27  ;;  %p1803_p5 = scmp.ne.s32.totalorder %s1795_s17, 0 }
  0xa0   : > { %v327_v14 = vld [vmem:[%s1672_s18] sm:$0xf]  ;;  %v1153_v16 = vld [vmem:[#allocation7 + $0x30] sm:$0xff]   ;;  %v1155_v18 = vld [vmem:[#allocation8] sm:$0xff]   ;;  %s1404_s16 = smov [#allocation11]  }
  0xa1   : > { %v1154_v17 = vld [vmem:[#allocation7 + $0x38] sm:$0xff]   ;;  %v1156_v19 = vld [vmem:[#allocation8 + $0x8] sm:$0xff]   ;;  %v1157_v20 = vld [vmem:[#allocation8 + $0x10] sm:$0xff]   ;;  %p1321_p7 = pnand %p1320_p6, %p1803_p5  ;;  %s1323_s29 = sshll.u32 %s1404_s16, 4  ;;  %s1324_s29 = int_to_ptr.vmem [resolvable:$false] %s1323_s29 }
  0xa2   : > { %971 = vmatpush3.bf16.msra.mxu0 %v1140_v2  ;;  %991 = vmatpush3.bf16.msra.mxu1 %v1148_v6  ;;  %v1158_v21 = vld [vmem:[#allocation8 + $0x18] sm:$0xff]   ;;  %v1159_v22 = vld [vmem:[#allocation8 + $0x20] sm:$0xff]   ;;  %v1160_v29 = vld [vmem:[#allocation8 + $0x28] sm:$0xff]   ;;  %s1325_s8 = scalar_lea.vmem %s1324_s29, 256  ;;  %p1326_p12 = scmp.lt.s32.totalorder %s1737_s7, %s1324_s29 }
  0xa3   : > { %972 = vmatprep.subr.bf16.mxu0 %v1402_v0  ;;  %992 = vmatprep.subr.bf16.mxu1 %v1402_v0  ;;  %v1161_v30 = vld [vmem:[#allocation8 + $0x30] sm:$0xff]   ;;  %v1162_v31 = vld [vmem:[#allocation8 + $0x38] sm:$0xff]   ;;  %v1163_v32 = vld [vmem:[#allocation10] sm:$0xff]   ;;  %p1322_p9 = pneg %p1321_p7  ;;  %p1327_p3 = scmp.lt.s32.totalorder %s1325_s8, %s1319_s27 }
  0xa4   : > { %v1164_v33 = vld [vmem:[#allocation10 + $0x8] sm:$0xff]   ;;  %v1165_v34 = vld [vmem:[#allocation10 + $0x10] sm:$0xff]   ;;  %v1166_v35 = vld [vmem:[#allocation10 + $0x18] sm:$0xff]  }
  0xa5   : > { %v1167_v36 = vld [vmem:[#allocation10 + $0x20] sm:$0xff]   ;;  %v1168_v43 = vld [vmem:[#allocation10 + $0x28] sm:$0xff]   ;;  %v1169_v44 = vld [vmem:[#allocation10 + $0x30] sm:$0xff]   ;;  %p1328_p13 = por %p1327_p3, %p1326_p12 }
  0xa6   : > { %973 = vmatpush3.bf16.msra.mxu0 %v1141_v3  ;;  %993 = vmatpush3.bf16.msra.mxu1 %v1149_v8  ;;  %v1170_v45 = vld [vmem:[#allocation10 + $0x38] sm:$0xff]  }
  0xa7   : > { %974 = vmatprep.subr.bf16.mxu0 %v1402_v0  ;;  %994 = vmatprep.subr.bf16.mxu1 %v1402_v0  ;;  %v919_v52 = vld [vmem:[%s1784_s5] ss:$0 sm:$0xff]  ;;  %p1329_p0 = pnand %p1328_p13, %p1322_p9 }
  0xaa   : > { %975 = vmatpush3.bf16.msra.mxu0 %v1142_v5  ;;  %995 = vmatpush3.bf16.msra.mxu1 %v1150_v10 }
  0xab   : > { %976 = vmatprep.subr.bf16.mxu0 %v1402_v0  ;;  %996 = vmatprep.subr.bf16.mxu1 %v1402_v0 }
  0xae   : > { %977 = vmatpush3.bf16.msra.mxu0 %v1143_v7  ;;  %997 = vmatpush3.bf16.msra.mxu1 %v1151_v12 }
  0xaf   : > { %978 = vmatprep.subr.bf16.mxu0 %v1402_v0  ;;  %998 = vmatprep.subr.bf16.mxu1 %v1402_v0 }
  0xb2   : > { %979 = vmatpush3.bf16.msra.mxu0 %v1144_v9  ;;  %999 = vmatpush3.bf16.msra.mxu1 %v1152_v15 }
  0xb3   : > { %980 = vmatprep.subr.bf16.mxu0 %v1402_v0  ;;  %1000 = vmatprep.subr.bf16.mxu1 %v1402_v0 }
  0xb6   : > { %981 = vmatpush3.bf16.msra.mxu0 %v1145_v11  ;;  %1001 = vmatpush3.bf16.msra.mxu1 %v1153_v16 }
  0xb7   : > { %982 = vmatprep.subr.bf16.mxu0 %v1402_v0  ;;  %1002 = vmatprep.subr.bf16.mxu1 %v1402_v0 }
  0xba   : > { %983 = vmatpush3.bf16.msra.mxu0 %v1146_v13  ;;  %1003 = vmatpush3.bf16.msra.mxu1 %v1154_v17 }
  0xbb   : > { %1008 = vmatprep.subr.bf16.mxu0 %v1402_v0  ;;  %1028 = vmatprep.subr.bf16.mxu1 %v1402_v0 }
  0xbd   : > { %985 = vmatmul.mubr.bf16.vlgmr.msra.gmra.mrb[0].mxu0 %v327_v14 }
  0xbe   : > { %1024 = vmatprep.mubr.msk.bf16.mxu0 %vm1403_vm0, %v1402_v0  ;;  %1009 = vmatpush3.bf16.msra.mxu0 %v1155_v18 }
  0xbf   : > { %1010 = vmatprep.subr.bf16.mxu0 %v1402_v0 }
  0xc2   : > { %1011 = vmatpush3.bf16.msra.mxu0 %v1156_v19 }
  0xc3   : > { %1012 = vmatprep.subr.bf16.mxu0 %v1402_v0 }
  0xc6   : > { %1013 = vmatpush3.bf16.msra.mxu0 %v1157_v20 }
  0xc7   : > { %1014 = vmatprep.subr.bf16.mxu0 %v1402_v0 }
  0xca   : > { %1015 = vmatpush3.bf16.msra.mxu0 %v1158_v21 }
  0xcb   : > { %1016 = vmatprep.subr.bf16.mxu0 %v1402_v0 }
  0xce   : > { %1017 = vmatpush3.bf16.msra.mxu0 %v1159_v22 }
  0xcf   : > { %1018 = vmatprep.subr.bf16.mxu0 %v1402_v0 }
  0xd2   : > { %1019 = vmatpush3.bf16.msra.mxu0 %v1160_v29 }
  0xd3   : > { %1020 = vmatprep.subr.bf16.mxu0 %v1402_v0 }
  0xd6   : > { %1021 = vmatpush3.bf16.msra.mxu0 %v1161_v30 }
  0xd7   : > { %1022 = vmatprep.subr.bf16.mxu0 %v1402_v0 }
  0xda   : > { %1023 = vmatpush3.bf16.msra.mxu0 %v1162_v31 }
 0x190   : > { %v426_v23 = vpop.f32.mrb[0].mxu0 }
 0x191   : > { %1171 = vtanh.f32 %v426_v23  ;;  %v986_v24 = vpop.f32.mrb[1].mxu0 }
 0x192   : > { %v429_v25 = vpop.f32.mrb[2].mxu0 }
 0x193   : > { %v987_v26 = vpop.f32.mrb[3].mxu0 }
 0x19b   : > { %v1172_v27 = vpop.eup %1171 }
 0x19c   : > { %v433_v28 = vpack.c.bf16 %v1172_v27, %v1172_v27 }
 0x19e   : > { %1005 = vmatmul.mubr.bf16.vlgmr.msra.gmra.mrb[0].mxu1 %v433_v28 }
 0x19f   : > { %1044 = vmatprep.mubr.msk.bf16.mxu1 %vm1403_vm0, %v1402_v0  ;;  %1029 = vmatpush3.bf16.msra.mxu1 %v1163_v32 }
 0x1a0   : > { %1030 = vmatprep.subr.bf16.mxu1 %v1402_v0 }
 0x1a3   : > { %1031 = vmatpush3.bf16.msra.mxu1 %v1164_v33 }
 0x1a4   : > { %1032 = vmatprep.subr.bf16.mxu1 %v1402_v0 }
 0x1a7   : > { %1033 = vmatpush3.bf16.msra.mxu1 %v1165_v34 }
 0x1a8   : > { %1034 = vmatprep.subr.bf16.mxu1 %v1402_v0 }
 0x1ab   : > { %1035 = vmatpush3.bf16.msra.mxu1 %v1166_v35 }
 0x1ac   : > { %1036 = vmatprep.subr.bf16.mxu1 %v1402_v0 }
 0x1af   : > { %1037 = vmatpush3.bf16.msra.mxu1 %v1167_v36 }
 0x1b0   : > { %1038 = vmatprep.subr.bf16.mxu1 %v1402_v0 }
 0x1b3   : > { %1039 = vmatpush3.bf16.msra.mxu1 %v1168_v43 }
 0x1b4   : > { %1040 = vmatprep.subr.bf16.mxu1 %v1402_v0 }
 0x1b7   : > { %1041 = vmatpush3.bf16.msra.mxu1 %v1169_v44 }
 0x1b8   : > { %1042 = vmatprep.subr.bf16.mxu1 %v1402_v0 }
 0x1bb   : > { %1043 = vmatpush3.bf16.msra.mxu1 %v1170_v45 }
 0x271   : > { %v532_v37 = vpop.f32.mrb[0].mxu1 }
 0x272   : > { %1173 = vtanh.f32 %v532_v37  ;;  %v1006_v38 = vpop.f32.mrb[1].mxu1 }
 0x273   : > { %v535_v39 = vpop.f32.mrb[2].mxu1 }
 0x274   : > { %v1007_v40 = vpop.f32.mrb[3].mxu1 }
 0x27c   : > { %v1174_v41 = vpop.eup %1173 }
 0x27d   : > { %v539_v42 = vpack.c.bf16 %v1174_v41, %v1174_v41 }
 0x27f   : > { %1025 = vmatmul.mubr.bf16.vlgmr.msra.gmra.mrb[4].mxu0 %v539_v42 }
 0x352   : > { %v638_v46 = vpop.f32.mrb[4].mxu0 }
 0x353   : > { %1175 = vtanh.f32 %v638_v46  ;;  %v1026_v47 = vpop.f32.mrb[5].mxu0 }
 0x354   : > { %v641_v48 = vpop.f32.mrb[6].mxu0 }
 0x355   : > { %v1027_v49 = vpop.f32.mrb[7].mxu0 }
 0x35d   : > { %v1176_v50 = vpop.eup %1175 }
 0x35e   : > { %v645_v51 = vpack.c.bf16 %v1176_v50, %v1176_v50 }
 0x360   : > { %1045 = vmatmul.mubr.bf16.vlgmr.msra.gmra.mrb[4].mxu1 %v645_v51 }
 0x433   : > { %v750_v53 = vpop.f32.mrb[4].mxu1 }
 0x434   : > { %v751_v54 = vadd.f32 %v919_v52, %v750_v53  ;;  %v1046_v55 = vpop.f32.mrb[5].mxu1 }
 0x435   : > { %v753_v56 = vpop.f32.mrb[6].mxu1 }
 0x436   : > { %756 = vst [vmem:[%s324_s30] sm:$0xff] %v751_v54  ;;  %v1047_v57 = vpop.f32.mrb[7].mxu1 }
 0x437   : > { %1332 = shalt.err (!%p1329_p0)
}
 0x438   : > { %s1333_s14 = scalar_lea.hbm %s1735_s11, 128  ;;  %s1337_s19 = scalar_lea.hbm %s1785_s6, 256 }
 0x439   : > { %p1334_p2 = scmp.ne.s32.totalorder %s1735_s11, %s1333_s14  ;;  %p1338_p10 = scmp.lt.u32.totalorder %s1735_s11, %s1785_s6 }
 0x43a   : > { %p1339_p11 = scmp.lt.u32.totalorder %s1337_s19, %s1333_s14  ;;  %p1341_p6 = scmp.lt.u32.totalorder %s1333_s14, %s1735_s11 }
 0x43b   : > { %p1335_p8 = pnand %p1334_p2, %p1803_p5 }
 0x43c   : > { %p1340_p1 = por %p1339_p11, %p1338_p10 }
 0x43d   : > { %p1336_p4 = pneg %p1335_p8 }
 0x43e   : > { %p1342_p7 = por %p1341_p6, %p1340_p1 }
 0x440   : > { %p1343_p9 = pnand %p1342_p7, %p1336_p4 }
 0x442   : > { %1346 = shalt.err (!%p1343_p9)
}
 0x443   : > { %1066 = dma.vmem_to_hbm [thread:$0]  (%p1803_p5), %s1737_s7, 128, %s1735_s11, %s758_s9  }
 0x444 PF: > { %s783_s30 = sand.u32 1, %s1381_s21   ;;  %p1804_p12 = scmp.ne.s32.totalorder %s1796_s25, 0 }
 0x445   : > { %p1805_p3 = scmp.ge.s32.totalorder %s1393_s24, 2  ;;  %s784_s10 = scalar_lea.sflag [#allocation4], %s783_s30 }
 0x447   : > { %p1086_p13 = pnand %p1805_p3, %p1804_p12 }
 0x449   : > { %1376 = dma.done.wait (!%p1086_p13), %s784_s10, 128  }
 0x44a   : > { %1378 = vsyncadd (!%p1086_p13), %s784_s10, 4294967168  ;;  %p21_p0 = scmp.ge.s32.totalorder %s1592_s15, 4   ;;  %s1806_s21 = smov %s1385_s22 }
 0x44b   : > { %s1807_s22 = smov %s1389_s23  ;;  %s1808_s23 = smov %s1603_s26 }
 0x44c   : > { %s1809_s24 = smov %s1592_s15  ;;  %23 = sbr.rel (!%p21_p0) target bundleno = 7 (0x7), region = 105 }
 0x453   :  { %789 = vsyncpa [#allocation3], 1 }
 0x454   :  { %791 = vsyncpa [#allocation3 + $0x1], 1 }
 0x455   :  { %792 = vsyncpa [#allocation6], 1 }
 0x456   :  { %793 = vsyncpa [#allocation9], 1 }
 0x457   :  { %794 = vsyncpa [#allocation4], 1 }
 0x458   :  { %796 = vsyncpa [#allocation4 + $0x1], 1 }

</bundles_post_ra>
